<compile_context>
chip_gen: v6e
topology: v6e:2x2x1
jax: 0.10.0
libtpu: 0.0.40
codegen_flags: <defaults>
</compile_context>

<pallas_src>
import math

import jax
import jax.numpy as jnp
from jax.experimental import pallas as pl
from jax.experimental.pallas import tpu as pltpu


# ----------------------------------------------------------------------------
# Kernels
# ----------------------------------------------------------------------------
def gating_kernel_single(x_ref, w_ref, b_ref, o_ref):
    """Single K step: full (TB, D) x-tile x (D, E) weight -> softmax -> store."""
    logits = jnp.dot(x_ref[...], w_ref[...], preferred_element_type=jnp.float32)
    logits = logits + b_ref[...]
    m = jnp.max(logits, axis=-1, keepdims=True)
    e = jnp.exp(logits - m)
    # Exact division (epilogue is off the critical path) so gate probabilities
    # sum to 1 for downstream consumers.
    o_ref[...] = (e / jnp.sum(e, axis=-1, keepdims=True)).astype(o_ref.dtype)
    # TODO(synk): if the masked E=8 output store ever shows up in the bundle,
    # pad the expert axis to 128 lanes in the wrapper (lane-dense vst).


def gating_kernel_acc(x_ref, w_ref, b_ref, o_ref, acc_ref):
    """Multi K-step: accumulate partial matmuls in f32 VMEM; softmax on last."""
    k = pl.program_id(1)

    @pl.when(k == 0)
    def _():
        acc_ref[...] = jnp.zeros_like(acc_ref)

    acc_ref[...] += jnp.dot(
        x_ref[...], w_ref[...], preferred_element_type=jnp.float32
    )

    @pl.when(k == pl.num_programs(1) - 1)
    def _():
        logits = acc_ref[...] + b_ref[...]
        m = jnp.max(logits, axis=-1, keepdims=True)
        e = jnp.exp(logits - m)
        o_ref[...] = (e / jnp.sum(e, axis=-1, keepdims=True)).astype(o_ref.dtype)


# ----------------------------------------------------------------------------
# Tiling / wrapper
# ----------------------------------------------------------------------------
def _round_up(x, m):
    return ((x + m - 1) // m) * m


def _choose_tiles(B, D, itemsize):
    """Pick (TB, TD, vmem_limit) with generation-aware VMEM budgeting."""
    try:
        vmem_cap = pltpu.get_tpu_info().vmem_capacity_bytes
    except Exception:
        vmem_cap = 128 << 20
    if vmem_cap >= (100 << 20):  # v5e / v6e: 128 MiB physical
        x_budget = 28 << 20
        vmem_limit = 96 << 20
    else:                        # v7x: 64 MiB physical / 32 MiB scoped
        x_budget = 24 << 20
        vmem_limit = 48 << 20

    def pick_td(tb):
        # Full D if the double-buffered x tile fits the budget, else a
        # 128-multiple sized against it.
        if 2 * tb * D * itemsize <= x_budget:
            return D
        return max(128, (x_budget // (2 * tb * itemsize)) // 128 * 128)

    tb_full = min(512, _round_up(B, 8))
    tb_split = min(512, _round_up(pl.cdiv(B, 2), 8))  # >=2 batch tiles for v7x

    td_split = pick_td(tb_split)
    # Take the 2-way batch split (both v7x TCs pull the x stream) unless it
    # would drop the per-step x tile below ~4 MiB (grid-step overhead tax).
    if tb_split == tb_full or tb_split * td_split * itemsize >= (4 << 20):
        tb, td = tb_split, td_split
    else:
        tb = tb_full
        td = pick_td(tb_full)
    return tb, td, vmem_limit


def gating_network(x, weight, bias):
    """x: (B, D), weight: (D, E), bias: (E,) -> (B, E) f32 gate probabilities.

    Equivalent to F.softmax(x @ weight + bias, dim=-1). Inputs are streamed as
    bfloat16 (pass bf16 directly in production to avoid the wrapper cast);
    accumulation, softmax and output are float32.
    """
    B, D = x.shape
    E = weight.shape[1]

    # Stream bf16 (halves the dominant HBM byte stream); f32 math downstream.
    x_s = x if x.dtype == jnp.bfloat16 else x.astype(jnp.bfloat16)
    w_s = weight if weight.dtype == jnp.bfloat16 else weight.astype(jnp.bfloat16)
    bias2d = bias.astype(jnp.float32).reshape(1, E)

    TB, TD, vmem_limit = _choose_tiles(B, D, jnp.dtype(jnp.bfloat16).itemsize)

    # Zero-pad B and D to tile multiples (zero cols of x x zero rows of W are
    # matmul-neutral; padded batch rows are sliced off the output).
    Bp = _round_up(B, TB)
    Dp = _round_up(D, TD)
    if Bp != B or Dp != D:
        x_s = jnp.pad(x_s, ((0, Bp - B), (0, Dp - D)))
    if Dp != D:
        w_s = jnp.pad(w_s, ((0, Dp - D), (0, 0)))

    nb = Bp // TB
    nk = Dp // TD
    out_shape = jax.ShapeDtypeStruct((Bp, E), jnp.float32)

    if nk == 1:
        # Single K step: no accumulator, no predicated regions.
        out_padded = pl.pallas_call(
            gating_kernel_single,
            out_shape=out_shape,
            grid=(nb,),
            in_specs=[
                pl.BlockSpec((TB, TD), lambda i: (i, 0)),   # x tile (streamed)
                pl.BlockSpec((TD, E), lambda i: (0, 0)),    # full weight (resident)
                pl.BlockSpec((1, E), lambda i: (0, 0)),     # bias (resident)
            ],
            out_specs=pl.BlockSpec((TB, E), lambda i: (i, 0)),
            compiler_params=pltpu.CompilerParams(
                dimension_semantics=("parallel",),
                vmem_limit_bytes=vmem_limit,
            ),
        )(x_s, w_s, bias2d)
    else:
        # TODO(synk): for large E, keep the full (D, E) weight resident with a
        # constant-index BlockSpec instead of re-streaming the K slab per batch
        # tile; at E=8 the redundant W traffic is negligible.
        out_padded = pl.pallas_call(
            gating_kernel_acc,
            out_shape=out_shape,
            grid=(nb, nk),  # reduction axis last
            in_specs=[
                pl.BlockSpec((TB, TD), lambda i, k: (i, k)),  # x tile (streamed)
                pl.BlockSpec((TD, E), lambda i, k: (k, 0)),   # weight K-slab
                pl.BlockSpec((1, E), lambda i, k: (0, 0)),    # bias (resident)
            ],
            out_specs=pl.BlockSpec((TB, E), lambda i, k: (i, 0)),
            scratch_shapes=[pltpu.VMEM((TB, E), jnp.float32)],
            compiler_params=pltpu.CompilerParams(
                dimension_semantics=("parallel", "arbitrary"),
                vmem_limit_bytes=vmem_limit,
            ),
        )(x_s, w_s, bias2d)

    return out_padded[:B] if Bp != B else out_padded


if __name__ == "__main__":
    # Small shapes consistent with the module: batch=8, input_dim=32, experts=8.
    B, D, E = 8, 32, 8

    key = jax.random.PRNGKey(0)
    kx, kw, kb = jax.random.split(key, 3)

    # nn.Linear default init: U(-1/sqrt(in_features), 1/sqrt(in_features)).
    bound = 1.0 / math.sqrt(D)
    weight = jax.random.uniform(kw, (D, E), jnp.float32, -bound, bound)
    bias = jax.random.uniform(kb, (E,), jnp.float32, -bound, bound)
    x = jax.random.normal(kx, (B, D), jnp.float32)

    out = gating_network(x, weight, bias)
    jax.block_until_ready(out)

    assert out.shape == (B, E)
    assert out.dtype == jnp.float32

    # Reference with the same bf16-cast inputs (isolates kernel correctness).
    x_bf = x.astype(jnp.bfloat16).astype(jnp.float32)
    w_bf = weight.astype(jnp.bfloat16).astype(jnp.float32)
    ref = jax.nn.softmax(x_bf @ w_bf + bias, axis=-1)
    assert jnp.allclose(out, ref, atol=2e-3, rtol=2e-3), float(
        jnp.max(jnp.abs(out - ref))
    )
    # Loose check against full-f32 module semantics (bf16 streaming error).
    ref_f32 = jax.nn.softmax(x @ weight + bias, axis=-1)
    assert jnp.allclose(out, ref_f32, atol=3e-2, rtol=3e-2), float(
        jnp.max(jnp.abs(out - ref_f32))
    )
    # Gate probabilities normalize exactly (exact division in the epilogue).
    assert jnp.allclose(jnp.sum(out, axis=-1), jnp.ones((B,)), atol=1e-3)

    print("KERNEL_OK")
</pallas_src>

<mosaic_0001>
module attributes {stable_mosaic.version = 11 : i64} {
  func.func @gating_kernel_single(%arg0: i32, %arg1: memref<8x32xbf16, #tpu.memory_space<vmem>>, %arg2: memref<32x8xbf16, #tpu.memory_space<vmem>>, %arg3: memref<1x8xf32, #tpu.memory_space<vmem>>, %arg4: memref<8x8xf32, #tpu.memory_space<vmem>>) attributes {dimension_semantics = [#tpu.dimension_semantics<parallel>], iteration_bounds = array<i64: 1>, scalar_prefetch = 0 : i64, scratch_operands = 0 : i64, tpu.core_type = #tpu.core_type<tc>, window_params = [{transform_indices = @transform_0, window_bounds = array<i64: 8, 32>}, {pipeline_mode = #tpu.pipeline_mode<synchronous>, transform_indices = @transform_1, window_bounds = array<i64: 32, 8>}, {pipeline_mode = #tpu.pipeline_mode<synchronous>, transform_indices = @transform_2, window_bounds = array<i64: 1, 8>}, {transform_indices = @transform_3, window_bounds = array<i64: 8, 8>}]} {
    %c0 = arith.constant 0 : index
    %c0_0 = arith.constant 0 : index
    %0 = vector.load %arg1[%c0, %c0_0] : memref<8x32xbf16, #tpu.memory_space<vmem>>, vector<8x32xbf16>
    %c0_1 = arith.constant 0 : index
    %c0_2 = arith.constant 0 : index
    %1 = vector.load %arg2[%c0_1, %c0_2] : memref<32x8xbf16, #tpu.memory_space<vmem>>, vector<32x8xbf16>
    %cst = arith.constant dense<0.000000e+00> : vector<8x8xf32>
    %2 = tpu.matmul %0, %1, %cst {dimension_numbers = #tpu.dot_dimension_numbers<[1], [0], [0], [1], [0, 0, 1, 1], [], []>} : vector<8x32xbf16>, vector<32x8xbf16>, vector<8x8xf32> -> vector<8x8xf32>
    %c0_3 = arith.constant 0 : index
    %c0_4 = arith.constant 0 : index
    %3 = vector.load %arg3[%c0_3, %c0_4] : memref<1x8xf32, #tpu.memory_space<vmem>>, vector<1x8xf32>
    %4 = vector.broadcast %3 : vector<1x8xf32> to vector<8x8xf32>
    %5 = arith.addf %2, %4 : vector<8x8xf32>
    %cst_5 = arith.constant dense<0xFF800000> : vector<8xf32>
    %6 = vector.multi_reduction <maximumf>, %5, %cst_5 [1] : vector<8x8xf32> to vector<8xf32>
    %7 = vector.shape_cast %6 : vector<8xf32> to vector<8x1xf32>
    %8 = vector.broadcast %7 : vector<8x1xf32> to vector<8x8xf32>
    %9 = arith.subf %5, %8 : vector<8x8xf32>
    %10 = math.exp %9 : vector<8x8xf32>
    %cst_6 = arith.constant dense<0.000000e+00> : vector<8xf32>
    %11 = vector.multi_reduction <add>, %10, %cst_6 [1] : vector<8x8xf32> to vector<8xf32>
    %12 = vector.shape_cast %11 : vector<8xf32> to vector<8x1xf32>
    %13 = vector.broadcast %12 : vector<8x1xf32> to vector<8x8xf32>
    %14 = arith.divf %10, %13 : vector<8x8xf32>
    %c0_7 = arith.constant 0 : index
    %c0_8 = arith.constant 0 : index
    %15 = vector.load %arg4[%c0_7, %c0_8] : memref<8x8xf32, #tpu.memory_space<vmem>>, vector<8x8xf32>
    tpu.vector_store %arg4[%c0_7, %c0_8], %14 {strides = array<i32>} : memref<8x8xf32, #tpu.memory_space<vmem>>, vector<8x8xf32>,
    return
  }
  func.func @transform_0(%arg0: i32) -> (i32, i32) {
    %c0_i32 = arith.constant 0 : i32
    %c0_i32_0 = arith.constant 0 : i32
    return %arg0, %c0_i32 : i32, i32
  }
  func.func @transform_1(%arg0: i32) -> (i32, i32) {
    %c0_i32 = arith.constant 0 : i32
    %c0_i32_0 = arith.constant 0 : i32
    %c0_i32_1 = arith.constant 0 : i32
    return %c0_i32, %c0_i32_0 : i32, i32
  }
  func.func @transform_2(%arg0: i32) -> (i32, i32) {
    %c0_i32 = arith.constant 0 : i32
    %c0_i32_0 = arith.constant 0 : i32
    %c0_i32_1 = arith.constant 0 : i32
    return %c0_i32, %c0_i32_0 : i32, i32
  }
  func.func @transform_3(%arg0: i32) -> (i32, i32) {
    %c0_i32 = arith.constant 0 : i32
    %c0_i32_0 = arith.constant 0 : i32
    return %arg0, %c0_i32 : i32, i32
  }
}

</mosaic_0001>

<bundles_post_ra>
// kernel: tpu_custom_call.1
= control target key start
LH: loop header
LB: loop body
LE: loop exit
PB: predicated region body
PF: predicated region fallthrough
CT: control target
= control target key end

     0   :  { %v157_v1 = vmov 0.0   ;;  %vm158_vm0 = vmmov 0   ;;  %s198_s0 = inlined_call_operand.vmem [shape: bf16[8,32], index: 0, kind: input, shape index: {}]   ;;  %s199_s1 = inlined_call_operand.vmem [shape: bf16[32,8], index: 1, kind: input, shape index: {}]   ;;  %s200_s2 = inlined_call_operand.vmem [shape: f32[1,8], index: 2, kind: input, shape index: {}]   ;;  %s201_s3 = inlined_call_operand.hbm [shape: f32[8,8], index: 3, kind: output, shape index: {}]  }
   0x1   :  { %v129_v0 = vld [vmem:[%s199_s1 + $0x8] sm:$0xff]   ;;  %118 = vmatprep.subr.bf16.mxu0 %v157_v1  ;;  %v130_v2 = vld [vmem:[%s199_s1] sm:$0xff]   ;;  %122 = vmatprep.mubr.msk.bf16.mxu0 %vm158_vm0, %v157_v1 }
   0x2   :  { %119 = vmatpush3.bf16.msra.mxu0 %v129_v0 }
   0x3   :  { %120 = vmatprep.subr.bf16.mxu0 %v157_v1 }
   0x4   :  { %8 = vsyncpa [#allocation3], 0  ;;  %v16_v3 = vld [vmem:[%s198_s0] sm:$0xf]  ;;  %vm40_vm1 = vcmask 261120   ;;  %vm84_vm2 = vcmask 64512  }
   0x5   :  { %v111_v4 = vld [vmem:[%s200_s2] ss:$0 sm:$0xff]  ;;  %s159_s0 = smov [#allocation2]  }
   0x6   :  { %121 = vmatpush3.bf16.msra.mxu0 %v130_v2  ;;  %s103_s1 = sshll.u32 %s159_s0, 4  ;;  %s104_s1 = int_to_ptr.vmem [resolvable:$true] %s103_s1 }
   0x7   :  { %s135_s2 = scalar_lea.vmem %s104_s1, 128  ;;  %p140_p1 = scmp.lt.s32.totalorder %s104_s1, %s104_s1 }
   0x8   :  { %p136_p0 = scmp.ne.s32.totalorder %s104_s1, %s135_s2  ;;  %p141_p2 = scmp.lt.s32.totalorder %s135_s2, %s135_s2 }
   0x9   :  { %123 = vmatmul.mubr.msk.bf16.vlgmr.msra.gmra.mxu0 %vm40_vm1, %v16_v3 }
   0xa   :  { %p142_p3 = por %p141_p2, %p140_p1 }
   0xc   :  { %p143_p4 = pnand %p142_p3, %p136_p0 }
  0xc9   :  { %v78_v5 = vpop.f32.mrf.mxu0 }
  0xca   :  { %v79_v6 = vadd.f32 %v111_v4, %v78_v5 }
  0xcb   :  { %v124_v7 = vpop.f32.mrf.mxu0 }
  0xcc   :  { %v85_v8 = vsel %vm84_vm2, %v79_v6, -inf }
  0xcd   :  { %86 = vmax.xlane.f32.xlu0 %v85_v8  ;;  %v81_v9 = vpop.f32.mrf.mxu0 }
  0xcf   :  { %v125_v10 = vpop.f32.mrf.mxu0 }
 0x156   :  { %v87_v11 = vpop.xlane.xlu0 %86 }
 0x157   :  { %v88_v12 = vsub.f32 %v79_v6, %v87_v11 }
 0x159   :  { %v89_v13 = vmul.f32 1.442695, %v88_v12 }
 0x15b   :  { %131 = vpow2.f32 %v89_v13 }
 0x168   :  { %v132_v14 = vpop.eup %131 }
 0x169   :  { %v91_v15 = vsel %vm84_vm2, %v132_v14, 0.0 }
 0x16a   :  { %92 = vadd.xlane.f32.xlu0 %v91_v15 }
 0x1f3   :  { %v93_v16 = vpop.xlane.xlu0 %92 }
 0x1f4   :  { %133 = vrcp.f32 %v93_v16 }
 0x201   :  { %v134_v17 = vpop.eup %133 }
 0x202   :  { %v95_v18 = vmul.f32 %v134_v17, %v132_v14 }
 0x204   :  { %96 = vst.msk [vmem:[#allocation2] sm:$0xff] %vm84_vm2, %v95_v18 }
 0x205   :  { %146 = shalt.err (!%p143_p4)
}
 0x206   :  { %106 = dma.vmem_to_hbm [thread:$0]  %s104_s1, 128, %s201_s3, [#allocation3]  }
 0x207   :  { %155 = dma.done.wait [#allocation3], 128  }
 0x208   :  { %156 = vsyncadd [#allocation3], 4294967168 }
 0x209   :  { %110 = vsyncpa [#allocation3], 1 }

</bundles_post_ra>
